<compile_context>
chip_gen: v7x
topology: tpu7x:2x2x1
jax: 0.10.0
libtpu: 0.0.40
codegen_flags: <defaults>
</compile_context>

<pallas_src>
import numpy as np
import jax
import jax.numpy as jnp
from jax.experimental import pallas as pl
from jax.experimental.pallas import tpu as pltpu

BN_EPS = 1e-5
VMEM_LIMIT = 32 * 1024 * 1024


# ----------------------------- Pallas kernels ------------------------------

def conv_stats_kernel(p_ref, w_ref, o_ref, sum_ref, ssq_ref):
    """Phase A for BN convs: matmul + per-channel sum / sum-of-squares."""
    @pl.when(pl.program_id(0) == 0)
    def _():
        sum_ref[...] = jnp.zeros_like(sum_ref)
        ssq_ref[...] = jnp.zeros_like(ssq_ref)
    acc = jnp.dot(p_ref[...], w_ref[...], preferred_element_type=jnp.float32)
    o_ref[...] = acc
    sum_ref[...] = sum_ref[...] + jnp.sum(acc, axis=0, keepdims=True)
    ssq_ref[...] = ssq_ref[...] + jnp.sum(acc * acc, axis=0, keepdims=True)


def make_affine_act_kernel(neg_slope: float):
    """Phase B for BN convs: y = x*scale + shift, then LeakyReLU."""
    def kernel(x_ref, scale_ref, shift_ref, o_ref):
        y = x_ref[...] * scale_ref[...] + shift_ref[...]
        if neg_slope != 1.0:
            y = jnp.where(y >= 0, y, y * neg_slope)
        o_ref[...] = y
    return kernel


def make_matmul_bias_act_kernel(neg_slope: float):
    """Non-BN conv: matmul + bias + (optional) LeakyReLU, fused."""
    def kernel(p_ref, w_ref, b_ref, o_ref):
        y = jnp.dot(p_ref[...], w_ref[...], preferred_element_type=jnp.float32)
        y = y + b_ref[...]
        if neg_slope != 1.0:
            y = jnp.where(y >= 0, y, y * neg_slope)
        o_ref[...] = y
    return kernel


def yolo_kernel(p_ref, e_ref, a_ref, m_ref, o_ref):
    """Lane-dense YOLO transform: (exp/sigmoid selected by mask + add) * mul."""
    p = p_ref[...]
    t = jnp.where(e_ref[...] > 0, jnp.exp(p), jax.nn.sigmoid(p))
    o_ref[...] = (t + a_ref[...]) * m_ref[...]


# ------------------------------ helpers -------------------------------------

def _round_up(x, m):
    return ((x + m - 1) // m) * m


def im2col_nhwc(x, k, stride, pad):
    """NHWC patch extraction -> (N*OH*OW, KH*KW*C).  No transposes needed."""
    N, H, W, C = x.shape
    xp = jnp.pad(x, ((0, 0), (pad, pad), (pad, pad), (0, 0)))
    OH = (H + 2 * pad - k) // stride + 1
    OW = (W + 2 * pad - k) // stride + 1
    cols = []
    for di in range(k):
        for dj in range(k):
            cols.append(xp[:, di:di + stride * OH:stride,
                           dj:dj + stride * OW:stride, :])
    patches = jnp.concatenate(cols, axis=-1)
    return patches.reshape(N * OH * OW, k * k * C), OH, OW


# ------------------------------ layer wrappers ------------------------------

def conv_layer(x, p):
    """x is NHWC.  Fused im2col-matmul (+BN batch-stats) (+LeakyReLU)."""
    N = x.shape[0]
    k, s, pad = p['ksize'], p['stride'], p['pad']
    F = p['weight'].shape[0]
    patches, OH, OW = im2col_nhwc(x, k, s, pad)
    M, K = patches.shape

    Kp = _round_up(K, 8)                 # sublane-aligned contraction dim
    Fp = _round_up(F, 128)               # lane-dense output channels
    tile_m = 512 if M >= 1024 else 128
    Mp = _round_up(M, tile_m)
    grid_m = Mp // tile_m

    patches = jnp.pad(patches, ((0, Mp - M), (0, Kp - K)))
    # PyTorch weight (F, C, KH, KW) -> (KH, KW, C, F) -> (K, F), pad to (Kp, Fp)
    w2d = jnp.transpose(p['weight'], (2, 3, 1, 0)).reshape(K, F)
    w2d = jnp.pad(w2d, ((0, Kp - K), (0, Fp - F)))

    neg_slope = 0.1 if p['leaky'] else 1.0

    if p['bn']:
        # ---- phase A: matmul + per-channel sum / sumsq (resident accumulators)
        conv_raw, ch_sum, ch_ssq = pl.pallas_call(
            conv_stats_kernel,
            out_shape=(jax.ShapeDtypeStruct((Mp, Fp), jnp.float32),
                       jax.ShapeDtypeStruct((1, Fp), jnp.float32),
                       jax.ShapeDtypeStruct((1, Fp), jnp.float32)),
            grid=(grid_m,),
            in_specs=[
                pl.BlockSpec((tile_m, Kp), lambda i: (i, 0)),
                pl.BlockSpec((Kp, Fp), lambda i: (0, 0)),
            ],
            out_specs=(
                pl.BlockSpec((tile_m, Fp), lambda i: (i, 0)),
                pl.BlockSpec((1, Fp), lambda i: (0, 0)),
                pl.BlockSpec((1, Fp), lambda i: (0, 0)),
            ),
            compiler_params=pltpu.CompilerParams(
                dimension_semantics=("arbitrary",),      # accumulator across M
                vmem_limit_bytes=VMEM_LIMIT),
        )(patches, w2d)

        # ---- fold batch statistics into per-channel scale/shift (tiny, host/XLA)
        mean = ch_sum / float(M)
        var = jnp.maximum(ch_ssq / float(M) - mean * mean, 0.0)
        gamma = jnp.pad(p['gamma'], (0, Fp - F)).reshape(1, Fp)
        beta = jnp.pad(p['beta'], (0, Fp - F)).reshape(1, Fp)
        scale = gamma * jax.lax.rsqrt(var + BN_EPS)
        shift = beta - mean * scale

        # ---- phase B: affine + LeakyReLU, parallel over M
        out = pl.pallas_call(
            make_affine_act_kernel(neg_slope),
            out_shape=jax.ShapeDtypeStruct((Mp, Fp), jnp.float32),
            grid=(grid_m,),
            in_specs=[
                pl.BlockSpec((tile_m, Fp), lambda i: (i, 0)),
                pl.BlockSpec((1, Fp), lambda i: (0, 0)),
                pl.BlockSpec((1, Fp), lambda i: (0, 0)),
            ],
            out_specs=pl.BlockSpec((tile_m, Fp), lambda i: (i, 0)),
            compiler_params=pltpu.CompilerParams(
                dimension_semantics=("parallel",),
                vmem_limit_bytes=VMEM_LIMIT),
        )(conv_raw, scale, shift)
    else:
        bias = jnp.pad(p['bias'], (0, Fp - F)).reshape(1, Fp)
        out = pl.pallas_call(
            make_matmul_bias_act_kernel(neg_slope),
            out_shape=jax.ShapeDtypeStruct((Mp, Fp), jnp.float32),
            grid=(grid_m,),
            in_specs=[
                pl.BlockSpec((tile_m, Kp), lambda i: (i, 0)),
                pl.BlockSpec((Kp, Fp), lambda i: (0, 0)),
                pl.BlockSpec((1, Fp), lambda i: (0, 0)),
            ],
            out_specs=pl.BlockSpec((tile_m, Fp), lambda i: (i, 0)),
            compiler_params=pltpu.CompilerParams(
                dimension_semantics=("parallel",),
                vmem_limit_bytes=VMEM_LIMIT),
        )(patches, w2d, bias)

    return out[:M, :F].reshape(N, OH, OW, F)     # stays NHWC


def upsample_bilinear_x2(x):
    # TODO(synk): bilinear 2x upsample (nn.Upsample, align_corners=False) kept
    # as plain-JAX gather+lerp glue; not the hot path at these sizes.  NHWC.
    N, H, W, C = x.shape

    def idx(L):
        o = np.arange(2 * L, dtype=np.float64)
        src = (o + 0.5) / 2.0 - 0.5
        i0 = np.floor(src).astype(np.int32)
        f = (src - i0).astype(np.float32)
        return np.clip(i0, 0, L - 1), np.clip(i0 + 1, 0, L - 1), f

    h0, h1, hf = idx(H)
    w0, w1, wf = idx(W)
    hf = jnp.asarray(hf)[None, :, None, None]
    wf = jnp.asarray(wf)[None, None, :, None]
    xh = x[:, h0, :, :] * (1.0 - hf) + x[:, h1, :, :] * hf
    return xh[:, :, w0, :] * (1.0 - wf) + xh[:, :, w1, :] * wf


def predict_transform(x, in_dim, anchors, num_classes):
    """x is NHWC (N, G, G, nA*A). Returns (N, G*G*nA, 5+num_classes)."""
    N, G, _, _ = x.shape
    stride = in_dim // G
    nA = len(anchors)
    A = 5 + num_classes
    M = G * G * nA
    # NHWC reshape already matches the PyTorch view/transpose/view ordering.
    pred = x.reshape(N, M, A)

    g = np.arange(G, dtype=np.float32)
    xv, yv = np.meshgrid(g, g)
    xy = np.stack([xv.reshape(-1), yv.reshape(-1)], axis=1)        # (G*G, 2)
    xy = np.repeat(xy, nA, axis=0)                                 # (M, 2)
    anch = np.asarray(anchors, dtype=np.float32) / float(stride)   # (nA, 2)
    anch = np.tile(anch, (G * G, 1))                               # (M, 2)

    add = np.zeros((M, A), np.float32)
    add[:, 0:2] = xy
    mul = np.ones((M, A), np.float32)
    mul[:, 0:2] = float(stride)
    mul[:, 2:4] = anch * float(stride)
    isexp = np.zeros((M, A), np.float32)
    isexp[:, 2:4] = 1.0

    # Flatten everything to a lane-dense (rows, 128) slab.
    lane = 128
    total = N * M * A
    rows = _round_up(-(-total // lane), 8)
    block_rows = min(rows, 1024)
    rows_p = _round_up(rows, block_rows)
    padded = rows_p * lane

    def to_slab_np(a):
        f = np.tile(a.reshape(-1), N)
        f = np.pad(f, (0, padded - total))
        return jnp.asarray(f.reshape(rows_p, lane))

    pred_flat = jnp.pad(pred.reshape(-1), (0, padded - total)).reshape(rows_p, lane)

    out = pl.pallas_call(
        yolo_kernel,
        out_shape=jax.ShapeDtypeStruct((rows_p, lane), jnp.float32),
        grid=(rows_p // block_rows,),
        in_specs=[pl.BlockSpec((block_rows, lane), lambda i: (i, 0))] * 4,
        out_specs=pl.BlockSpec((block_rows, lane), lambda i: (i, 0)),
        compiler_params=pltpu.CompilerParams(
            dimension_semantics=("parallel",),
            vmem_limit_bytes=VMEM_LIMIT),
    )(pred_flat, to_slab_np(isexp), to_slab_np(add), to_slab_np(mul))

    return out.reshape(-1)[:total].reshape(N, M, A)


# ------------------------ synthetic cfg + parameters ------------------------
# (replaces parse_cfg: no file I/O — a small in-script mini-YOLO block list)

def mini_yolo_blocks():
    return [
        {'type': 'net', 'height': '16', 'width': '16', 'channels': '3'},
        {'type': 'convolutional', 'batch_normalize': '1', 'filters': '8',
         'size': '3', 'stride': '1', 'pad': '1', 'activation': 'leaky'},
        {'type': 'convolutional', 'batch_normalize': '1', 'filters': '16',
         'size': '3', 'stride': '2', 'pad': '1', 'activation': 'leaky'},
        {'type': 'convolutional', 'batch_normalize': '1', 'filters': '8',
         'size': '1', 'stride': '1', 'pad': '1', 'activation': 'leaky'},
        {'type': 'convolutional', 'batch_normalize': '1', 'filters': '16',
         'size': '3', 'stride': '1', 'pad': '1', 'activation': 'leaky'},
        {'type': 'shortcut', 'from': '-3', 'activation': 'linear'},
        {'type': 'convolutional', 'filters': '21', 'size': '1', 'stride': '1',
         'pad': '1', 'activation': 'linear'},
        {'type': 'yolo', 'mask': '0,1,2',
         'anchors': '2,3, 4,5, 6,7, 3,4, 5,6, 7,8', 'classes': '2', 'num': '6'},
        {'type': 'route', 'layers': '-3'},
        {'type': 'convolutional', 'batch_normalize': '1', 'filters': '8',
         'size': '1', 'stride': '1', 'pad': '1', 'activation': 'leaky'},
        {'type': 'upsample', 'stride': '2'},
        {'type': 'route', 'layers': '-1,-10'},
        {'type': 'convolutional', 'filters': '21', 'size': '1', 'stride': '1',
         'pad': '1', 'activation': 'linear'},
        {'type': 'yolo', 'mask': '3,4,5',
         'anchors': '2,3, 4,5, 6,7, 3,4, 5,6, 7,8', 'classes': '2', 'num': '6'},
    ]


def init_params(blocks, key):
    """Mirrors create_modules' filter bookkeeping; deterministic PRNG init."""
    prev_filters = 3
    filters = prev_filters
    output_filters = []
    params = []
    for i, blk in enumerate(blocks[1:]):
        layer = {'type': blk['type']}
        if blk['type'] == 'convolutional':
            bn = int(blk['batch_normalize']) if 'batch_normalize' in blk else 0
            filters = int(blk['filters'])
            ksize = int(blk['size'])
            stride = int(blk['stride'])
            pad = (ksize - 1) // 2 if int(blk['pad']) else 0
            key, kw, k1, k2 = jax.random.split(key, 4)
            layer.update(
                weight=0.1 * jax.random.normal(
                    kw, (filters, prev_filters, ksize, ksize), jnp.float32),
                ksize=ksize, stride=stride, pad=pad, bn=bn,
                leaky=(blk['activation'] == 'leaky'))
            if bn:
                layer['gamma'] = 1.0 + 0.1 * jax.random.normal(k1, (filters,), jnp.float32)
                layer['beta'] = 0.1 * jax.random.normal(k2, (filters,), jnp.float32)
            else:
                layer['bias'] = 0.1 * jax.random.normal(k1, (filters,), jnp.float32)
        elif blk['type'] == 'route':
            parts = blk['layers'].split(',')
            start = int(parts[0])
            end = int(parts[1]) if len(parts) > 1 else 0
            if start > 0:
                start -= i
            if end > 0:
                end -= i
            if end < 0:
                filters = output_filters[i + start] + output_filters[i + end]
            else:
                filters = output_filters[i + start]
        elif blk['type'] == 'yolo':
            masks = [int(m) for m in blk['mask'].split(',')]
            anchors = [int(a) for a in blk['anchors'].split(',')]
            anchors = [(anchors[j], anchors[j + 1]) for j in range(0, len(anchors), 2)]
            layer['anchors'] = [anchors[j] for j in masks]
            layer['classes'] = int(blk['classes'])
        # 'upsample' / 'shortcut': no params
        params.append(layer)
        prev_filters = filters
        output_filters.append(filters)
    return params


# -------------------------------- forward -----------------------------------

def darknet_forward(blocks, params, x_nchw):
    net_info = blocks[0]
    modules = blocks[1:]
    x = jnp.transpose(x_nchw, (0, 2, 3, 1))          # boundary: NCHW -> NHWC
    outputs = {}
    detections = None
    for i, module in enumerate(modules):
        mtype = module['type']
        if mtype == 'convolutional':
            x = conv_layer(x, params[i])
        elif mtype == 'upsample':
            x = upsample_bilinear_x2(x)
        elif mtype == 'route':
            layers = [int(l) for l in module['layers'].split(',')]
            if layers[0] > 0:
                layers[0] -= i
            if len(layers) == 1:
                x = outputs[i + layers[0]]
            else:
                if layers[1] > 0:
                    layers[1] -= i
                # channels-last concat
                x = jnp.concatenate((outputs[i + layers[0]], outputs[i + layers[1]]), axis=-1)
        elif mtype == 'shortcut':
            # plain '+' — XLA fuses it; a dedicated kernel was pure launch overhead
            from_ = int(module['from'])
            x = outputs[i - 1] + outputs[i + from_]
        elif mtype == 'yolo':
            in_dim = int(net_info['height'])
            x = predict_transform(x, in_dim, params[i]['anchors'], params[i]['classes'])
            detections = x if detections is None else jnp.concatenate((detections, x), axis=1)
        outputs[i] = x
    return detections


if __name__ == "__main__":
    key = jax.random.PRNGKey(0)
    kx, kp = jax.random.split(key)
    blocks = mini_yolo_blocks()
    params = init_params(blocks, kp)
    x = jax.random.normal(kx, (2, 3, 16, 16), jnp.float32)   # NCHW, matches net height/width=16

    det = darknet_forward(blocks, params, x)
    det = jax.block_until_ready(det)

    expected = (2, 8 * 8 * 3 + 16 * 16 * 3, 7)   # two YOLO heads concatenated on dim 1
    assert det.shape == expected, det.shape
    assert bool(jnp.all(jnp.isfinite(det)))
    print("KERNEL_OK")
</pallas_src>

<mosaic_0001>
module attributes {stable_mosaic.version = 11 : i64} {
  func.func @conv_stats_kernel(%arg0: i32, %arg1: memref<128x32xf32, #tpu.memory_space<vmem>>, %arg2: memref<32x128xf32, #tpu.memory_space<vmem>>, %arg3: memref<128x128xf32, #tpu.memory_space<vmem>>, %arg4: memref<1x128xf32, #tpu.memory_space<vmem>>, %arg5: memref<1x128xf32, #tpu.memory_space<vmem>>) attributes {dimension_semantics = [#tpu.dimension_semantics<arbitrary>], iteration_bounds = array<i64: 4>, scalar_prefetch = 0 : i64, scratch_operands = 0 : i64, tpu.core_type = #tpu.core_type<tc>, window_params = [{transform_indices = @transform_0, window_bounds = array<i64: 128, 32>}, {pipeline_mode = #tpu.pipeline_mode<synchronous>, transform_indices = @transform_1, window_bounds = array<i64: 32, 128>}, {transform_indices = @transform_2, window_bounds = array<i64: 128, 128>}, {pipeline_mode = #tpu.pipeline_mode<synchronous>, transform_indices = @transform_3, window_bounds = array<i64: 1, 128>}, {pipeline_mode = #tpu.pipeline_mode<synchronous>, transform_indices = @transform_4, window_bounds = array<i64: 1, 128>}]} {
    %c0_i32 = arith.constant 0 : i32
    %0 = arith.cmpi eq, %arg0, %c0_i32 : i32
    %1 = arith.extui %0 : i1 to i32
    %c0_i32_0 = arith.constant 0 : i32
    %2 = arith.cmpi ne, %1, %c0_i32_0 : i32
    scf.if %2 {
      %cst_16 = arith.constant 0.000000e+00 : f32
      %18 = vector.broadcast %cst_16 : f32 to vector<1x128xf32>
      %c0_17 = arith.constant 0 : index
      %c0_18 = arith.constant 0 : index
      %19 = vector.load %arg4[%c0_17, %c0_18] : memref<1x128xf32, #tpu.memory_space<vmem>>, vector<1x128xf32>
      tpu.vector_store %arg4[%c0_17, %c0_18], %18 {strides = array<i32>} : memref<1x128xf32, #tpu.memory_space<vmem>>, vector<1x128xf32>,
      %cst_19 = arith.constant 0.000000e+00 : f32
      %20 = vector.broadcast %cst_19 : f32 to vector<1x128xf32>
      %c0_20 = arith.constant 0 : index
      %c0_21 = arith.constant 0 : index
      %21 = vector.load %arg5[%c0_20, %c0_21] : memref<1x128xf32, #tpu.memory_space<vmem>>, vector<1x128xf32>
      tpu.vector_store %arg5[%c0_20, %c0_21], %20 {strides = array<i32>} : memref<1x128xf32, #tpu.memory_space<vmem>>, vector<1x128xf32>,
    } else {
    }
    %c0 = arith.constant 0 : index
    %c0_1 = arith.constant 0 : index
    %3 = vector.load %arg1[%c0, %c0_1] : memref<128x32xf32, #tpu.memory_space<vmem>>, vector<128x32xf32>
    %c0_2 = arith.constant 0 : index
    %c0_3 = arith.constant 0 : index
    %4 = vector.load %arg2[%c0_2, %c0_3] : memref<32x128xf32, #tpu.memory_space<vmem>>, vector<32x128xf32>
    %cst = arith.constant dense<0.000000e+00> : vector<128x128xf32>
    %5 = tpu.matmul %3, %4, %cst {dimension_numbers = #tpu.dot_dimension_numbers<[1], [0], [0], [1], [0, 0, 1, 1], [], []>} : vector<128x32xf32>, vector<32x128xf32>, vector<128x128xf32> -> vector<128x128xf32>
    %c0_4 = arith.constant 0 : index
    %c0_5 = arith.constant 0 : index
    %6 = vector.load %arg3[%c0_4, %c0_5] : memref<128x128xf32, #tpu.memory_space<vmem>>, vector<128x128xf32>
    tpu.vector_store %arg3[%c0_4, %c0_5], %5 {strides = array<i32>} : memref<128x128xf32, #tpu.memory_space<vmem>>, vector<128x128xf32>,
    %c0_6 = arith.constant 0 : index
    %c0_7 = arith.constant 0 : index
    %7 = vector.load %arg4[%c0_6, %c0_7] : memref<1x128xf32, #tpu.memory_space<vmem>>, vector<1x128xf32>
    %cst_8 = arith.constant dense<0.000000e+00> : vector<128xf32>
    %8 = vector.multi_reduction <add>, %5, %cst_8 [0] : vector<128x128xf32> to vector<128xf32>
    %9 = vector.shape_cast %8 : vector<128xf32> to vector<1x128xf32>
    %10 = arith.addf %7, %9 : vector<1x128xf32>
    %c0_9 = arith.constant 0 : index
    %c0_10 = arith.constant 0 : index
    %11 = vector.load %arg4[%c0_9, %c0_10] : memref<1x128xf32, #tpu.memory_space<vmem>>, vector<1x128xf32>
    tpu.vector_store %arg4[%c0_9, %c0_10], %10 {strides = array<i32>} : memref<1x128xf32, #tpu.memory_space<vmem>>, vector<1x128xf32>,
    %c0_11 = arith.constant 0 : index
    %c0_12 = arith.constant 0 : index
    %12 = vector.load %arg5[%c0_11, %c0_12] : memref<1x128xf32, #tpu.memory_space<vmem>>, vector<1x128xf32>
    %13 = arith.mulf %5, %5 : vector<128x128xf32>
    %cst_13 = arith.constant dense<0.000000e+00> : vector<128xf32>
    %14 = vector.multi_reduction <add>, %13, %cst_13 [0] : vector<128x128xf32> to vector<128xf32>
    %15 = vector.shape_cast %14 : vector<128xf32> to vector<1x128xf32>
    %16 = arith.addf %12, %15 : vector<1x128xf32>
    %c0_14 = arith.constant 0 : index
    %c0_15 = arith.constant 0 : index
    %17 = vector.load %arg5[%c0_14, %c0_15] : memref<1x128xf32, #tpu.memory_space<vmem>>, vector<1x128xf32>
    tpu.vector_store %arg5[%c0_14, %c0_15], %16 {strides = array<i32>} : memref<1x128xf32, #tpu.memory_space<vmem>>, vector<1x128xf32>,
    return
  }
  func.func @transform_0(%arg0: i32) -> (i32, i32) {
    %c0_i32 = arith.constant 0 : i32
    %c0_i32_0 = arith.constant 0 : i32
    return %arg0, %c0_i32 : i32, i32
  }
  func.func @transform_1(%arg0: i32) -> (i32, i32) {
    %c0_i32 = arith.constant 0 : i32
    %c0_i32_0 = arith.constant 0 : i32
    %c0_i32_1 = arith.constant 0 : i32
    return %c0_i32, %c0_i32_0 : i32, i32
  }
  func.func @transform_2(%arg0: i32) -> (i32, i32) {
    %c0_i32 = arith.constant 0 : i32
    %c0_i32_0 = arith.constant 0 : i32
    return %arg0, %c0_i32 : i32, i32
  }
  func.func @transform_3(%arg0: i32) -> (i32, i32) {
    %c0_i32 = arith.constant 0 : i32
    %c0_i32_0 = arith.constant 0 : i32
    %c0_i32_1 = arith.constant 0 : i32
    return %c0_i32, %c0_i32_0 : i32, i32
  }
  func.func @transform_4(%arg0: i32) -> (i32, i32) {
    %c0_i32 = arith.constant 0 : i32
    %c0_i32_0 = arith.constant 0 : i32
    %c0_i32_1 = arith.constant 0 : i32
    return %c0_i32, %c0_i32_0 : i32, i32
  }
}

</mosaic_0001>

<bundles_post_ra>
// kernel: tpu_custom_call.1
= control target key start
LH: loop header
LB: loop body
LE: loop exit
PB: predicated region body
PF: predicated region fallthrough
CT: control target
= control target key end

     0   :  { %10 = vsyncpa [#allocation3], 0  ;;  %s1183_s0 = inlined_call_operand.vmem [shape: f32[512,32], index: 0, kind: input, shape index: {}]   ;;  %s1184_s1 = inlined_call_operand.vmem [shape: f32[32,128], index: 1, kind: input, shape index: {}]   ;;  %s1185_s2 = inlined_call_operand.hbm [shape: f32[512,128], index: 2, kind: output, shape index: {0}]   ;;  %s1186_s3 = inlined_call_operand.hbm [shape: f32[1,128], index: 3, kind: output, shape index: {1}]   ;;  %s1187_s4 = inlined_call_operand.hbm [shape: f32[1,128], index: 4, kind: output, shape index: {2}]  }
   0x1   :  { %12 = vsyncpa [#allocation3 + $0x1], 0 }
   0x2   :  { %13 = vsyncpa [#allocation5], 0  ;;  %s919_s15 = smov 0   ;;  %s921_s16 = smov 0  }
   0x3   :  { %s923_s17 = smov 0   ;;  %s925_s18 = smov 0  }
   0x4 LB: > { %s940_s19 = sadd.s32 4294967295, %s886_s18   ;;  %s614_s20 = sadd.s32 4294967294, %s886_s18   ;;  %s886_s18 = sphi %s925_s18, %s1193_s18   ;;  %s882_s17 = sphi %s923_s17, %s1192_s17   ;;  %s878_s16 = sphi %s921_s16, %s1191_s16   ;;  %s874_s15 = sphi %s919_s15, %s1190_s15  }
   0x5   : > { %s944_s21 = sadd.s32 1, %s886_s18   ;;  %s73_s22 = sadd.s32 1, %s882_s17 }
   0x6   : > { %s70_s23 = ssub.s32 %s886_s18, %s944_s21  ;;  %p83_p0 = scmp.ne.s32.totalorder %s882_s17, %s878_s16 }
   0x7   : > { %p71_p1 = scmp.eq.s32.totalorder %s70_s23, 0  ;;  %p84_p2 = scmp.eq.s32.totalorder %s940_s19, 3 }
   0x8   : > { %p89_p3 = scmp.ne.s32.totalorder %s878_s16, %s874_s15  ;;  %p90_p4 = scmp.eq.s32.totalorder %s614_s20, 3 }
   0x9   : > { %s955_s24 = scalar_select %p71_p1, %s882_s17, %s73_s22  }
   0xa   : > { %p959_p5 = por %p84_p2, %p83_p0  ;;  %p963_p6 = por %p90_p4, %p89_p3 }
   0xb   : > { %p617_p7 = scmp.ge.s32.totalorder %s886_s18, 1  ;;  %p162_p8 = scmp.lt.s32.totalorder %s886_s18, 5 }
   0xd   : > { %p163_p9 = pnand %p617_p7, %p162_p8 }
   0xe   : > { %s181_s27 = sand.u32 (!%p163_p9), 1, %s878_s16   ;;  %s619_s28 = sshll.u32 (!%p163_p9), %s940_s19, 4 }
   0xf   : > { %166 = sbr.rel (%p163_p9) target bundleno = 346 (0x15a), region = 28  ;;  %s618_s29 = sshll.u32 (!%p163_p9), %s181_s27, 7 }
  0x10   : > { %p189_p10 = scmp.lt.s32.totalorder (!%p163_p9), %s619_s28, 63  ;;  %s978_s8 = scalar_lea.vmem (!%p163_p9), [#allocation2], %s618_s29 }
  0x11   : > { %p621_p11 = scmp.ne.s32.totalorder (!%p163_p9), %s940_s19, 0 }
  0x16   : > { %s1195_s28 = smov (!%p189_p10, %s619_s28), 63  ;;  %198 = sbr.rel (%p621_p11) target bundleno = 29 (0x1d), region = 32 }
  0x17   : > { %s620_s30 = sshll.u32 %s1195_s28, 3  ;;  %v888_v0 = vmov (!%p621_p11), 0.0  }
  0x18   : > { %s976_s7 = scalar_lea.vmem %s1183_s0, %s620_s30  ;;  %199 = vst [vmem:[#allocation4] sm:$0x1] (!%p621_p11), %v888_v0  ;;  %200 = vst [vmem:[#allocation6] sm:$0x1] (!%p621_p11), %v888_v0 }
  0x1d PF: > { %v217_v1 = vld [vmem:[%s1184_s1] sm:$0xff]  ;;  %v218_v2 = vld [vmem:[%s1184_s1 + $0x8] sm:$0xff]  ;;  %v219_v3 = vld [vmem:[%s1184_s1 + $0x10] sm:$0xff]  ;;  %vm221_vm0 = vcmask 261120   ;;  %s647_s23 = sshll.u32 %s940_s19, 11  ;;  %s509_s28 = sshll.u32 %s978_s8, 4  ;;  %s1062_s28 = int_to_ptr.vmem [resolvable:$true] %s509_s28 }
  0x1e   : > { %v700_v4 = vpack.c.bf16 %v218_v2, %v217_v1  ;;  %v220_v5 = vld [vmem:[%s1184_s1 + $0x18] sm:$0xff]  ;;  %v201_v6 = vld [vmem:[%s976_s7] sm:$0xff]  ;;  %v202_v9 = vld [vmem:[%s976_s7 + $0x8] sm:$0xff]  ;;  %s1060_s5 = scalar_lea.hbm %s1185_s2, %s647_s23  ;;  %s1073_s6 = scalar_lea.sflag [#allocation3], %s181_s27 }
  0x1f   : > { %v704_v7 = vpack.c.bf16 %v220_v5, %v219_v3  ;;  %676 = vmatprep.mubr.msk.f32.mxu0 %vm221_vm0, %v201_v6  ;;  %v209_v8 = vld [vmem:[%s976_s7 + $0x40] sm:$0xff]  ;;  %v210_v10 = vld [vmem:[%s976_s7 + $0x48] sm:$0xff]  ;;  %v203_v11 = vld [vmem:[%s976_s7 + $0x10] sm:$0xff]  ;;  %s889_s9 = smov [#allocation2]  }
  0x20   : > { %701 = vmatprep.subr.bf16.mxu0 %v700_v4  ;;  %708 = vmatprep.subr.bf16.mxu1 %v700_v4  ;;  %v211_v12 = vld [vmem:[%s976_s7 + $0x50] sm:$0xff]  ;;  %v204_v13 = vld [vmem:[%s976_s7 + $0x18] sm:$0xff]  ;;  %v205_v15 = vld [vmem:[%s976_s7 + $0x20] sm:$0xff]  ;;  %s772_s10 = sshll.u32 %s889_s9, 4  ;;  %s773_s10 = int_to_ptr.vmem [resolvable:$false] %s772_s10 }
  0x21   : > { %703 = vmatpush3.bf16.msra.mxu0 %v700_v4  ;;  %710 = vmatpush3.bf16.msra.mxu1 %v700_v4  ;;  %v212_v14 = vld [vmem:[%s976_s7 + $0x58] sm:$0xff]  ;;  %v213_v16 = vld [vmem:[%s976_s7 + $0x60] sm:$0xff]  ;;  %v206_v17 = vld [vmem:[%s976_s7 + $0x28] sm:$0xff]  ;;  %s774_s11 = scalar_lea.vmem %s773_s10, 4096  ;;  %p775_p1 = scmp.lt.s32.totalorder %s1062_s28, %s773_s10 }
  0x22   : > { %705 = vmatprep.subr.bf16.mxu0 %v704_v7  ;;  %709 = vmatprep.subr.bf16.mxu1 %v704_v7  ;;  %v214_v18 = vld [vmem:[%s976_s7 + $0x68] sm:$0xff]  ;;  %v207_v19 = vld [vmem:[%s976_s7 + $0x30] sm:$0xff]  ;;  %v208_v21 = vld [vmem:[%s976_s7 + $0x38] sm:$0xff] }
  0x23   : > { %688 = vmatprep.mubr.msk.f32.mxu1 %vm221_vm0, %v209_v8  ;;  %v215_v20 = vld [vmem:[%s976_s7 + $0x70] sm:$0xff]  ;;  %v216_v22 = vld [vmem:[%s976_s7 + $0x78] sm:$0xff]  ;;  %s768_s7 = scalar_lea.vmem %s1062_s28, 2048 }
  0x24   : > { %p769_p12 = scmp.ne.s32.totalorder %s1062_s28, %s768_s7  ;;  %p776_p3 = scmp.lt.s32.totalorder %s774_s11, %s768_s7 }
  0x25   : > { %707 = vmatpush3.bf16.msra.mxu0 %v704_v7  ;;  %711 = vmatpush3.bf16.msra.mxu1 %v704_v7 }
  0x26   : > { %p770_p13 = pnand %p769_p12, %p959_p5  ;;  %p777_p4 = por %p776_p3, %p775_p1 }
  0x28   : > { %677 = vmatmul.mubr.msk.f32.vlgmr.msra.gmra.mrb[0].mxu0 %vm221_vm0, %v202_v9  ;;  %689 = vmatmul.mubr.msk.f32.vlgmr.msra.gmra.mrb[0].mxu1 %vm221_vm0, %v210_v10  ;;  %p771_p0 = pneg %p770_p13 }
  0x29   : > { %679 = vmatprep.mubr.msk.f32.mxu0 %vm221_vm0, %v203_v11  ;;  %691 = vmatprep.mubr.msk.f32.mxu1 %vm221_vm0, %v211_v12 }
  0x2a   : > { %p778_p7 = pnand %p777_p4, %p771_p0 }
  0x2c   : > { %680 = vmatmul.mubr.msk.f32.gmra.mrb[2].mxu0 %vm221_vm0, %v204_v13  ;;  %692 = vmatmul.mubr.msk.f32.gmra.mrb[2].mxu1 %vm221_vm0, %v212_v14 }
  0x2d   : > { %682 = vmatprep.mubr.msk.f32.mxu0 %vm221_vm0, %v205_v15  ;;  %694 = vmatprep.mubr.msk.f32.mxu1 %vm221_vm0, %v213_v16 }
  0x30   : > { %683 = vmatmul.mubr.msk.f32.gmra.mrb[4].mxu0 %vm221_vm0, %v206_v17  ;;  %695 = vmatmul.mubr.msk.f32.gmra.mrb[4].mxu1 %vm221_vm0, %v214_v18 }
  0x31   : > { %685 = vmatprep.mubr.msk.f32.mxu0 %vm221_vm0, %v207_v19  ;;  %697 = vmatprep.mubr.msk.f32.mxu1 %vm221_vm0, %v215_v20 }
  0x34   : > { %686 = vmatmul.mubr.msk.f32.gmra.mrb[6].mxu0 %vm221_vm0, %v208_v21  ;;  %698 = vmatmul.mubr.msk.f32.gmra.mrb[6].mxu1 %vm221_vm0, %v216_v22 }
  0xfb   : > { %v678_v23 = vpop.f32.mrb[0].mxu0  ;;  %v1025_v24 = vpop.f32.mrb[0].mxu1 }
  0xfc   : > { %416 = vst [vmem:[%s978_s8 + $0x8] sm:$0xff] %v678_v23  ;;  %v457_v25 = vmul.f32 %v678_v23, %v678_v23  ;;  %v336_v26 = vpop.f32.mrb[1].mxu0  ;;  %424 = vst [vmem:[%s978_s8 + $0x48] sm:$0xff] %v1025_v24  ;;  %v1030_v27 = vpop.f32.mrb[1].mxu1 }
  0xfd   : > { %415 = vst [vmem:[%s978_s8] sm:$0xff] %v336_v26  ;;  %v432_v28 = vadd.f32 %v678_v23, %v336_v26  ;;  %v456_v29 = vmul.f32 %v336_v26, %v336_v26  ;;  %423 = vst [vmem:[%s978_s8 + $0x40] sm:$0xff] %v1030_v27 }
  0xff   : > { %v472_v30 = vadd.f32 %v457_v25, %v456_v29  ;;  %v681_v31 = vpop.f32.mrb[2].mxu0  ;;  %v1035_v32 = vpop.f32.mrb[2].mxu1 }
 0x100   : > { %418 = vst [vmem:[%s978_s8 + $0x18] sm:$0xff] %v681_v31  ;;  %v346_v33 = vpop.f32.mrb[3].mxu0  ;;  %426 = vst [vmem:[%s978_s8 + $0x58] sm:$0xff] %v1035_v32  ;;  %v1040_v34 = vpop.f32.mrb[3].mxu1  ;;  %v459_v37 = vmul.f32 %v681_v31, %v681_v31 }
 0x101   : > { %417 = vst [vmem:[%s978_s8 + $0x10] sm:$0xff] %v346_v33  ;;  %v433_v35 = vadd.f32 %v432_v28, %v346_v33  ;;  %v458_v36 = vmul.f32 %v346_v33, %v346_v33  ;;  %425 = vst [vmem:[%s978_s8 + $0x50] sm:$0xff] %v1040_v34 }
 0x103   : > { %v473_v38 = vadd.f32 %v472_v30, %v458_v36  ;;  %v684_v39 = vpop.f32.mrb[4].mxu0  ;;  %v434_v40 = vadd.f32 %v681_v31, %v433_v35  ;;  %v1045_v41 = vpop.f32.mrb[4].mxu1 }
 0x104   : > { %420 = vst [vmem:[%s978_s8 + $0x28] sm:$0xff] %v684_v39  ;;  %v356_v42 = vpop.f32.mrb[5].mxu0  ;;  %428 = vst [vmem:[%s978_s8 + $0x68] sm:$0xff] %v1045_v41  ;;  %v1052_v43 = vpop.f32.mrb[5].mxu1  ;;  %v461_v47 = vmul.f32 %v684_v39, %v684_v39 }
 0x105   : > { %419 = vst [vmem:[%s978_s8 + $0x20] sm:$0xff] %v356_v42  ;;  %v435_v44 = vadd.f32 %v434_v40, %v356_v42  ;;  %v460_v45 = vmul.f32 %v356_v42, %v356_v42  ;;  %v474_v46 = vadd.f32 %v473_v38, %v459_v37  ;;  %427 = vst [vmem:[%s978_s8 + $0x60] sm:$0xff] %v1052_v43 }
 0x107   : > { %v475_v48 = vadd.f32 %v474_v46, %v460_v45  ;;  %v687_v49 = vpop.f32.mrb[6].mxu0  ;;  %v436_v50 = vadd.f32 %v684_v39, %v435_v44  ;;  %v1064_v51 = vpop.f32.mrb[6].mxu1 }
 0x108   : > { %422 = vst [vmem:[%s978_s8 + $0x38] sm:$0xff] %v687_v49  ;;  %v366_v52 = vpop.f32.mrb[7].mxu0  ;;  %430 = vst [vmem:[%s978_s8 + $0x78] sm:$0xff] %v1064_v51  ;;  %v406_v53 = vpop.f32.mrb[7].mxu1 }
 0x109   : > { %421 = vst [vmem:[%s978_s8 + $0x30] sm:$0xff] %v366_v52  ;;  %v437_v54 = vadd.f32 %v436_v50, %v366_v52  ;;  %v462_v55 = vmul.f32 %v366_v52, %v366_v52  ;;  %v476_v56 = vadd.f32 %v475_v48, %v461_v47  ;;  %429 = vst [vmem:[%s978_s8 + $0x70] sm:$0xff] %v406_v53 }
 0x10a   : > { %781 = shalt.err (!%p778_p7)
}
 0x10b   : > { %s782_s27 = scalar_lea.hbm %s1060_s5, 2048  ;;  %s786_s13 = scalar_lea.hbm %s1185_s2, 8192 }
 0x10c   : > { %p783_p8 = scmp.ne.s32.totalorder %s1060_s5, %s782_s27  ;;  %p787_p11 = scmp.lt.u32.totalorder %s1060_s5, %s1185_s2 }
 0x10d   : > { %p788_p12 = scmp.lt.u32.totalorder %s786_s13, %s782_s27  ;;  %p790_p0 = scmp.lt.u32.totalorder %s782_s27, %s1060_s5 }
 0x10e   : > { %p784_p9 = pnand %p783_p8, %p959_p5 }
 0x10f   : > { %p789_p13 = por %p788_p12, %p787_p11 }
 0x110   : > { %p785_p10 = pneg %p784_p9 }
 0x111   : > { %p791_p1 = por %p790_p0, %p789_p13 }
 0x113   : > { %p792_p3 = pnand %p791_p1, %p785_p10 }
 0x115   : > { %795 = shalt.err (!%p792_p3)
}
 0x116   : > { %s890_s22 = smov 128   ;;  %s891_s23 = smov 8   ;;  %v463_v57 = vmul.f32 %v687_v49, %v687_v49  ;;  %v438_v58 = vadd.f32 %v687_v49, %v437_v54  ;;  %v477_v59 = vadd.f32 %v476_v56, %v462_v55  ;;  %v464_v60 = vmul.f32 %v1030_v27, %v1030_v27  ;;  %v431_v30 = vld [vmem:[#allocation4] sm:$0x1]  ;;  %v455_v33 = vld [vmem:[#allocation6] sm:$0x1] }
 0x117   : > { %712 = dma.vmem_to_hbm [thread:$0]  (%p959_p5), %s1062_s28, 2048, %s1060_s5, %s1073_s6, %s890_s22, %s890_s22, %s891_s23   ;;  %v465_v63 = vmul.f32 %v1025_v24, %v1025_v24  ;;  %v466_v2 = vmul.f32 %v1040_v34, %v1040_v34  ;;  %v467_v5 = vmul.f32 %v1035_v32, %v1035_v32  ;;  %v468_v8 = vmul.f32 %v1052_v43, %v1052_v43 }
 0x118   : > { %v478_v61 = vadd.f32 %v477_v59, %v463_v57  ;;  %v439_v62 = vadd.f32 %v438_v58, %v1030_v27  ;;  %v469_v11 = vmul.f32 %v1045_v41, %v1045_v41  ;;  %v470_v14 = vmul.f32 %v406_v53, %v406_v53  ;;  %s892_s25 = smov [#allocation4]   ;;  %s893_s29 = smov [#allocation6]  }
 0x119   : > { %v471_v17 = vmul.f32 %v1064_v51, %v1064_v51  ;;  %s523_s28 = sshll.u32 %s892_s25, 4  ;;  %s534_s30 = sshll.u32 %s893_s29, 4  ;;  %s524_s28 = int_to_ptr.vmem [resolvable:$true] %s523_s28  ;;  %s1118_s30 = int_to_ptr.vmem [resolvable:$true] %s534_s30 }
 0x11a   : > { %v479_v0 = vadd.f32 %v478_v61, %v464_v60  ;;  %v440_v1 = vadd.f32 %v1025_v24, %v439_v62  ;;  %s796_s5 = scalar_lea.vmem %s524_s28, 16  ;;  %s802_s6 = scalar_lea.vmem %s524_s28, 32 }
 0x11b   : > { %p797_p5 = scmp.ne.s32.totalorder %s524_s28, %s796_s5  ;;  %p803_p8 = scmp.lt.s32.totalorder %s524_s28, %s524_s28 }
 0x11c   : > { %v441_v3 = vadd.f32 %v440_v1, %v1040_v34  ;;  %v480_v4 = vadd.f32 %v479_v0, %v465_v63  ;;  %p804_p9 = scmp.lt.s32.totalorder %s802_s6, %s796_s5 }
 0x11d   : > { %p798_p4 = pnand %p797_p5, %p84_p2 }
 0x11e   : > { %v481_v6 = vadd.f32 %v480_v4, %v466_v2  ;;  %v442_v7 = vadd.f32 %v1035_v32, %v441_v3  ;;  %p805_p10 = por %p804_p9, %p803_p8 }
 0x11f   : > { %p799_p7 = pneg %p798_p4 }
 0x120   : > { %v443_v9 = vadd.f32 %v442_v7, %v1052_v43  ;;  %v482_v10 = vadd.f32 %v481_v6, %v467_v5 }
 0x121   : > { %p806_p11 = pnand %p805_p10, %p799_p7 }
 0x122   : > { %v483_v12 = vadd.f32 %v482_v10, %v468_v8  ;;  %v444_v13 = vadd.f32 %v1045_v41, %v443_v9 }
 0x124   : > { %v445_v15 = vadd.f32 %v444_v13, %v406_v53  ;;  %v484_v16 = vadd.f32 %v483_v12, %v469_v11 }
 0x126   : > { %v446_v18 = vadd.f32 %v1064_v51, %v445_v15  ;;  %v485_v19 = vadd.f32 %v484_v16, %v470_v14 }
 0x128   : > { %v447_v20 = vrot.slane %v446_v18, 4  ;;  %v486_v21 = vadd.f32 %v485_v19, %v471_v17 }
 0x12a   : > { %v448_v22 = vadd.f32 %v447_v20, %v446_v18  ;;  %v487_v23 = vrot.slane %v486_v21, 4 }
 0x12c   : > { %v449_v24 = vrot.slane %v448_v22, 2  ;;  %v488_v25 = vadd.f32 %v487_v23, %v486_v21 }
 0x12e   : > { %v450_v26 = vadd.f32 %v449_v24, %v448_v22  ;;  %v489_v27 = vrot.slane %v488_v25, 2 }
 0x130   : > { %v451_v28 = vrot.slane %v450_v26, 1  ;;  %v490_v29 = vadd.f32 %v489_v27, %v488_v25 }
 0x132   : > { %v452_v31 = vadd.f32 %v451_v28, %v450_v26  ;;  %v491_v32 = vrot.slane %v490_v29, 1 }
 0x134   : > { %v453_v34 = vadd.f32 %v452_v31, %v431_v30  ;;  %v492_v35 = vadd.f32 %v491_v32, %v490_v29 }
 0x136   : > { %454 = vst [vmem:[#allocation4] sm:$0x1] %v453_v34  ;;  %v493_v36 = vadd.f32 %v492_v35, %v455_v33 }
 0x137   : > { %809 = shalt.err (!%p806_p11)
}
 0x138   : > { %s810_s10 = scalar_lea.hbm %s1186_s3, 16 }
 0x139   : > { %p811_p12 = scmp.ne.s32.totalorder %s1186_s3, %s810_s10  ;;  %p816_p1 = scmp.lt.u32.totalorder %s810_s10, %s1186_s3 }
 0x13b   : > { %p812_p13 = pnand %p811_p12, %p84_p2 }
 0x13d   : > { %p813_p0 = pneg %p812_p13 }
 0x13f   : > { %p818_p3 = pnand %p816_p1, %p813_p0 }
 0x141   : > { %821 = shalt.err (!%p818_p3)
}
 0x142   : > { %714 = dma.vmem_to_hbm [thread:$0]  (%p84_p2), %s524_s28, 16, %s1186_s3, [#allocation5]   ;;  %494 = vst [vmem:[#allocation6] sm:$0x1] %v493_v36 }
 0x143   : > { %s822_s20 = scalar_lea.vmem %s1118_s30, 16  ;;  %s828_s22 = scalar_lea.vmem %s1118_s30, 32 }
 0x144   : > { %p823_p5 = scmp.ne.s32.totalorder %s1118_s30, %s822_s20  ;;  %p829_p8 = scmp.lt.s32.totalorder %s1118_s30, %s1118_s30 }
 0x145   : > { %p830_p9 = scmp.lt.s32.totalorder %s828_s22, %s822_s20 }
 0x146   : > { %p824_p4 = pnand %p823_p5, %p84_p2 }
 0x147   : > { %p831_p10 = por %p830_p9, %p829_p8 }
 0x148   : > { %p825_p7 = pneg %p824_p4 }
 0x14a   : > { %p832_p11 = pnand %p831_p10, %p825_p7 }
 0x14c   : > { %835 = shalt.err (!%p832_p11)
}
 0x14d   : > { %s836_s29 = scalar_lea.hbm %s1187_s4, 16 }
 0x14e   : > { %p837_p12 = scmp.ne.s32.totalorder %s1187_s4, %s836_s29  ;;  %p842_p1 = scmp.lt.u32.totalorder %s836_s29, %s1187_s4 }
 0x150   : > { %p838_p13 = pnand %p837_p12, %p84_p2 }
 0x152   : > { %p839_p0 = pneg %p838_p13 }
 0x154   : > { %p844_p3 = pnand %p842_p1, %p839_p0 }
 0x156   : > { %847 = shalt.err (!%p844_p3)
}
 0x157   : > { %716 = dma.vmem_to_hbm [thread:$0]  (%p84_p2), %s1118_s30, 16, %s1187_s4, [#allocation5]  }
 0x158   : > { %865 = dma.done.wait (%p84_p2), [#allocation5], 32  }
 0x159   : > { %867 = vsyncadd (%p84_p2), [#allocation5], 4294967264 }
 0x15a PF: > { %p730_p5 = scmp.ge.s32.totalorder %s886_s18, 2  ;;  %s554_s11 = sand.u32 1, %s874_s15  }
 0x15b   : > { %s555_s27 = scalar_lea.sflag [#allocation3], %s554_s11 }
 0x15c   : > { %p723_p4 = pnand %p730_p5, %p963_p6 }
 0x15e   : > { %869 = dma.done.wait (!%p723_p4), %s555_s27, 2048  }
 0x15f   : > { %871 = vsyncadd (!%p723_p4), %s555_s27, 4294965248  ;;  %p16_p7 = scmp.ge.s32.totalorder %s944_s21, 6   ;;  %s1190_s15 = smov %s878_s16 }
 0x160   : > { %s1191_s16 = smov %s882_s17  ;;  %s1192_s17 = smov %s955_s24 }
 0x161   : > { %s1193_s18 = smov %s944_s21  ;;  %18 = sbr.rel (!%p16_p7) target bundleno = 4 (0x4), region = 83 }
 0x168   :  { %560 = vsyncpa [#allocation3], 1 }
 0x169   :  { %562 = vsyncpa [#allocation3 + $0x1], 1 }
 0x16a   :  { %563 = vsyncpa [#allocation5], 1 }

</bundles_post_ra>
